<compile_context>
chip_gen: v6e
topology: v6e:2x2x1
jax: 0.10.0
libtpu: 0.0.40
codegen_flags: <defaults>
</compile_context>

<pallas_src>
import math
from functools import partial

import jax
import jax.numpy as jnp
from jax.experimental import pallas as pl
from jax.experimental.pallas import tpu as pltpu


# ------------------------------- helpers ---------------------------------- #

def _round_up(v: int, m: int) -> int:
    return ((v + m - 1) // m) * m


def _pick_tile(padded_dim: int, max_tile: int) -> int:
    """Largest tile <= max_tile that divides padded_dim (padded_dim % 128 == 0)."""
    if padded_dim <= max_tile:
        return padded_dim
    for cand in (max_tile, 2048, 1024, 512, 256, 128):
        if cand <= max_tile and padded_dim % cand == 0:
            return cand
    return 128


# ----------------------------- Pallas kernels ------------------------------ #

def _linear_kernel_single_k(x_ref, wt_ref, b_ref, o_ref):
    """Whole K in one tile: branch-free, bias fused into the store.

    x_ref  : (tm, Kp)  VMEM  activations (cast to bf16 on the VPU)
    wt_ref : (Kp, tn)  VMEM  bf16 transposed-weight tile
    b_ref  : (1,  tn)  VMEM  f32 bias tile
    o_ref  : (tm, tn)  VMEM  f32 output tile
    """
    acc = jnp.dot(x_ref[...].astype(jnp.bfloat16), wt_ref[...],
                  preferred_element_type=jnp.float32)
    o_ref[...] = (acc + b_ref[...]).astype(o_ref.dtype)


def _linear_kernel_multi_k(x_ref, wt_ref, b_ref, o_ref):
    """K-reduced tile: the f32 output block IS the accumulator.

    Correctness requires K to be the innermost ("arbitrary") grid axis so each
    (i, j) output block sees k == 0 before it is accumulated into (asserted in
    the wrapper by construction of the grid).
    """
    k = pl.program_id(2)

    @pl.when(k == 0)
    def _init():
        # Fold the bias into the init: no separate finalize add / copy pass.
        o_ref[...] = jnp.broadcast_to(b_ref[...], o_ref.shape)

    o_ref[...] += jnp.dot(x_ref[...].astype(jnp.bfloat16), wt_ref[...],
                          preferred_element_type=jnp.float32)


# ------------------------------ wrapper ------------------------------------ #

def pallas_linear(x, wt_padded, bias_padded, out_features, *,
                  tm=512, tn=None, tk=None):
    """y = x @ W^T + b (torch.nn.Linear semantics) as a tiled Pallas matmul.

    x           : [N, D_in]                (f32 or bf16)
    wt_padded   : [Kp, Dp]  bf16 transposed weight, padded to 128-multiples
    bias_padded : [1,  Dp]  f32 bias, zero padded
    out_features: true D_out (output sliced back to this width if padded)
    """
    N, d_in = x.shape
    Kp, Dp = wt_padded.shape
    assert d_in <= Kp

    tn = Dp if tn is None else tn
    tk = Kp if tk is None else tk
    assert Dp % tn == 0 and Kp % tk == 0

    # dtype-dependent sublane granularity for the M tile (f32: 8, bf16: 16).
    sub = 8 if jnp.dtype(x.dtype).itemsize >= 4 else 16
    tm_eff = min(tm, _round_up(N, sub))
    Mp = _round_up(N, tm_eff)

    # Pad activations only when actually necessary (skip the un-hidden HBM
    # copy in the common aligned case).
    if Mp != N or Kp != d_in:
        x = jnp.pad(x, ((0, Mp - N), (0, Kp - d_in)))

    m_tiles, n_tiles, k_tiles = Mp // tm_eff, Dp // tn, Kp // tk

    # v7x (2 TCs/chip): make sure the "parallel" axes have >= 2 iterations.
    # Only split when a clean, reasonably wide (>=256 lanes) tile exists.
    if m_tiles * n_tiles < 2:
        for cand in (tn // 2, 512, 256):
            if 256 <= cand < tn and cand % 128 == 0 and Dp % cand == 0:
                tn = cand
                n_tiles = Dp // tn
                break

    x_bytes = jnp.dtype(x.dtype).itemsize
    w_bytes = jnp.dtype(wt_padded.dtype).itemsize

    # CostEstimate counting block re-reads (x read n_tiles times, W m_tiles times).
    cost = pl.CostEstimate(
        flops=2 * Mp * Kp * Dp,
        transcendentals=0,
        bytes_accessed=(Mp * Kp * x_bytes * n_tiles
                        + Kp * Dp * w_bytes * m_tiles
                        + Dp * 4 * m_tiles
                        + Mp * Dp * 4),
    )

    # Explicit VMEM budget: double-buffered inputs + output + bias + margin.
    vmem_needed = 2 * (tm_eff * tk * x_bytes + tk * tn * w_bytes
                       + tm_eff * tn * 4 + tn * 4)
    vmem_limit = int(min(max(vmem_needed + (8 << 20), 32 << 20), 56 << 20))

    if k_tiles == 1:
        grid = (m_tiles, n_tiles)
        kernel = _linear_kernel_single_k
        in_specs = [
            pl.BlockSpec((tm_eff, tk), lambda i, j: (i, 0)),
            pl.BlockSpec((tk, tn), lambda i, j: (0, j)),
            pl.BlockSpec((1, tn), lambda i, j: (0, j)),
        ]
        out_specs = pl.BlockSpec((tm_eff, tn), lambda i, j: (i, j))
        dims = ("parallel", "parallel")
    else:
        # K MUST stay the innermost (last, "arbitrary") grid axis: the output
        # block doubles as the accumulator and is re-initialised at k == 0.
        grid = (m_tiles, n_tiles, k_tiles)
        kernel = _linear_kernel_multi_k
        in_specs = [
            pl.BlockSpec((tm_eff, tk), lambda i, j, k: (i, k)),
            pl.BlockSpec((tk, tn), lambda i, j, k: (k, j)),
            pl.BlockSpec((1, tn), lambda i, j, k: (0, j)),
        ]
        out_specs = pl.BlockSpec((tm_eff, tn), lambda i, j, k: (i, j))
        dims = ("parallel", "parallel", "arbitrary")

    out = pl.pallas_call(
        kernel,
        out_shape=jax.ShapeDtypeStruct((Mp, Dp), jnp.float32),
        grid_spec=pltpu.PrefetchScalarGridSpec(
            num_scalar_prefetch=0,
            grid=grid,
            in_specs=in_specs,
            out_specs=out_specs,
        ),
        compiler_params=pltpu.CompilerParams(
            dimension_semantics=dims,
            vmem_limit_bytes=vmem_limit,
        ),
        cost_estimate=cost,
    )(x, wt_padded, bias_padded)

    if Mp != N or Dp != out_features:
        out = out[:N, :out_features]
    return out


# --------------------------- FlexDim / FlexBlock --------------------------- #

class FlexDim:
    """Flexible dimension resolved from the forward example."""

    def __init__(self, pos: int = 0, dim: int = 1):
        self.pos = pos
        self.dim = dim

    def resolve(self, input_args, input_kwargs):
        d = input_args[self.pos].shape[self.dim]
        if d == 0:
            raise ValueError("Dimension cannot be zero.")
        elif d < 0:
            raise ValueError("Dimension cannot be less than zero.")
        return d

    def __repr__(self):
        return "{}({}, {})".format(self.__class__.__name__, self.pos, self.dim)


class PallasLinear:
    """torch.nn.Linear equivalent whose forward runs in a Pallas TPU kernel.

    Parameters are created in f32 (nn.Linear semantics); the transposed weight
    is padded to lane-dense 128-multiples and cast to bf16 ONCE at construction
    (weight-stationary).  Forward only (optionally) pads the activations.
    """

    # Default tile budget (bf16 inputs, f32 output/acc): with double buffering
    # a (512, 1024, 2048) tile set stays < ~20 MiB VMEM -- safe on v5e/v6e/v7x.
    _TM, _TN, _TK = 512, 1024, 2048

    def __init__(self, in_features: int, out_features: int, key=None,
                 dtype=jnp.float32):
        self.in_features = in_features
        self.out_features = out_features
        if key is None:
            key = jax.random.PRNGKey(0)
        kw, kb = jax.random.split(key)
        # Deterministic init matching torch.nn.Linear's U(-1/sqrt(in), 1/sqrt(in)).
        bound = 1.0 / math.sqrt(in_features)
        self.weight = jax.random.uniform(
            kw, (out_features, in_features), dtype, minval=-bound, maxval=bound)
        self.bias = jax.random.uniform(
            kb, (out_features,), dtype, minval=-bound, maxval=bound)

        # Pad dims to 128 first (minimal padding), then pick tiles that divide.
        Dp = _round_up(out_features, 128)
        Kp = _round_up(in_features, 128)
        self._tn = _pick_tile(Dp, self._TN)
        self._tk = _pick_tile(Kp, self._TK)

        # Transpose + pad ONCE, then cast the weight stream to bf16 (MXU fast
        # path, halves the dominant HBM/VMEM traffic).  Bias stays f32.
        wt = self.weight.T  # [D_in, D_out]
        self._wt_padded = jnp.pad(
            wt, ((0, Kp - in_features), (0, Dp - out_features))
        ).astype(jnp.bfloat16)
        self._bias_padded = jnp.pad(
            self.bias.astype(jnp.float32), (0, Dp - out_features)
        ).reshape(1, Dp)

    def __call__(self, x):
        return pallas_linear(
            x, self._wt_padded, self._bias_padded, self.out_features,
            tm=self._TM, tn=self._tn, tk=self._tk)


class FlexBlock:
    """Flexible block resolved upon the first forward call with an example.

    Mirrors caldera's FlexBlock: FlexDim args are replaced by the concrete
    dimension taken from the example input; the wrapped module is then
    constructed and used for this and all subsequent calls.
    """

    def __init__(self, module_fn, *args, **kwargs):
        self.module = module_fn
        self.args = args
        self.kwargs = kwargs
        self.resolved_module = None
        self.__resolved = False
        # TODO(synk): torch's `_apply` record/replay (device/dtype-cast hooks)
        # has no JAX equivalent; parameters are created directly on device.

    @property
    def is_resolved(self):
        return self.__resolved

    def resolve_args(self, input_args, input_kwargs):
        rargs = []
        for a in self.args:
            if isinstance(a, FlexDim):
                rargs.append(a.resolve(input_args, input_kwargs))
            elif a is FlexDim:
                raise ValueError(
                    "Found {}. Initialize FlexDim to use flexible dimensions, "
                    "`Flex.d()` or `FlexDim()`".format(a))
            else:
                rargs.append(a)
        return rargs

    def resolve_kwargs(self, input_args, input_kwargs):
        return self.kwargs

    def resolve(self, args, kwargs):
        resolved_args = self.resolve_args(args, kwargs)
        resolved_kwargs = self.resolve_kwargs(args, kwargs)
        self.__resolved = True
        self.resolved_module = self.module(*resolved_args, **resolved_kwargs)

    def __call__(self, *args, **kwargs):
        if not self.is_resolved:
            self.resolve(args, kwargs)
        return self.resolved_module(*args, **kwargs)

    def __repr__(self):
        if self.is_resolved:
            return "FlexBlock({})".format(repr(self.resolved_module))
        s = "{c}(\n\t(unresolved_module): {m}({args}, {kwargs}\n)".format(
            c=self.__class__.__name__,
            m=getattr(self.module, "__name__", str(self.module)),
            args=", ".join(str(a) for a in self.args),
            kwargs=",".join(str(k) + "=" + str(v) for k, v in self.kwargs.items()))
        return s


# --------------------------------- main ----------------------------------- #

if __name__ == "__main__":
    key = jax.random.PRNGKey(0)
    kx1, km1, kx2, km2 = jax.random.split(key, 4)

    # --- Test 1: FlexBlock lazy resolution; small Linear with in_features
    #     inferred from x.shape[1].  Exercises K padding (32 -> 128), the
    #     N slice (128 -> 16) and the branch-free single-K kernel.
    batch, hidden_in, hidden_out = 8, 32, 16
    x = jax.random.normal(kx1, (batch, hidden_in), dtype=jnp.float32)

    block = FlexBlock(partial(PallasLinear, key=km1), FlexDim(0, 1), hidden_out)
    assert not block.is_resolved

    y = jax.block_until_ready(block(x))      # lazy resolution happens here
    assert block.is_resolved
    assert y.shape == (batch, hidden_out)

    lin = block.resolved_module
    ref = (jnp.dot(x.astype(jnp.bfloat16), lin.weight.T.astype(jnp.bfloat16),
                   preferred_element_type=jnp.float32)
           + lin.bias.astype(jnp.float32))
    assert jnp.allclose(y, ref, atol=1e-3, rtol=1e-3), \
        float(jnp.max(jnp.abs(y - ref)))

    # --- Test 2: multi-tile M/N and multi-step K (output-block-as-accumulator
    #     path), exercising the no-pad / no-slice fast path.  Tiles forced
    #     small so the shapes stay small.
    b2, din2, dout2 = 48, 256, 384
    x2 = jax.random.normal(kx2, (b2, din2), dtype=jnp.float32)
    lin2 = PallasLinear(din2, dout2, key=km2)
    y2 = jax.block_until_ready(
        pallas_linear(x2, lin2._wt_padded, lin2._bias_padded, dout2,
                      tm=16, tn=128, tk=128))
    assert y2.shape == (b2, dout2)
    ref2 = (jnp.dot(x2.astype(jnp.bfloat16), lin2.weight.T.astype(jnp.bfloat16),
                    preferred_element_type=jnp.float32)
            + lin2.bias.astype(jnp.float32))
    assert jnp.allclose(y2, ref2, atol=1e-3, rtol=1e-3), \
        float(jnp.max(jnp.abs(y2 - ref2)))

    print("KERNEL_OK")
</pallas_src>

<mosaic_0001>
module attributes {stable_mosaic.version = 11 : i64} {
  func.func @_linear_kernel_single_k(%arg0: i32, %arg1: i32, %arg2: memref<8x128xf32, #tpu.memory_space<vmem>>, %arg3: memref<128x128xbf16, #tpu.memory_space<vmem>>, %arg4: memref<1x128xf32, #tpu.memory_space<vmem>>, %arg5: memref<8x128xf32, #tpu.memory_space<vmem>>) attributes {dimension_semantics = [#tpu.dimension_semantics<parallel>, #tpu.dimension_semantics<parallel>], iteration_bounds = array<i64: 1, 1>, scalar_prefetch = 0 : i64, scratch_operands = 0 : i64, tpu.core_type = #tpu.core_type<tc>, window_params = [{transform_indices = @transform_0, window_bounds = array<i64: 8, 128>}, {transform_indices = @transform_1, window_bounds = array<i64: 128, 128>}, {transform_indices = @transform_2, window_bounds = array<i64: 1, 128>}, {transform_indices = @transform_3, window_bounds = array<i64: 8, 128>}]} {
    %c0 = arith.constant 0 : index
    %c0_0 = arith.constant 0 : index
    %0 = vector.load %arg2[%c0, %c0_0] : memref<8x128xf32, #tpu.memory_space<vmem>>, vector<8x128xf32>
    %1 = arith.truncf %0 : vector<8x128xf32> to vector<8x128xbf16>
    %c0_1 = arith.constant 0 : index
    %c0_2 = arith.constant 0 : index
    %2 = vector.load %arg3[%c0_1, %c0_2] : memref<128x128xbf16, #tpu.memory_space<vmem>>, vector<128x128xbf16>
    %cst = arith.constant dense<0.000000e+00> : vector<8x128xf32>
    %3 = tpu.matmul %1, %2, %cst {dimension_numbers = #tpu.dot_dimension_numbers<[1], [0], [0], [1], [0, 0, 1, 1], [], []>} : vector<8x128xbf16>, vector<128x128xbf16>, vector<8x128xf32> -> vector<8x128xf32>
    %c0_3 = arith.constant 0 : index
    %c0_4 = arith.constant 0 : index
    %4 = vector.load %arg4[%c0_3, %c0_4] : memref<1x128xf32, #tpu.memory_space<vmem>>, vector<1x128xf32>
    %5 = vector.broadcast %4 : vector<1x128xf32> to vector<8x128xf32>
    %6 = arith.addf %3, %5 : vector<8x128xf32>
    %c0_5 = arith.constant 0 : index
    %c0_6 = arith.constant 0 : index
    %7 = vector.load %arg5[%c0_5, %c0_6] : memref<8x128xf32, #tpu.memory_space<vmem>>, vector<8x128xf32>
    tpu.vector_store %arg5[%c0_5, %c0_6], %6 {strides = array<i32>} : memref<8x128xf32, #tpu.memory_space<vmem>>, vector<8x128xf32>,
    return
  }
  func.func @transform_0(%arg0: i32, %arg1: i32) -> (i32, i32) {
    %c0_i32 = arith.constant 0 : i32
    %c0_i32_0 = arith.constant 0 : i32
    return %arg0, %c0_i32 : i32, i32
  }
  func.func @transform_1(%arg0: i32, %arg1: i32) -> (i32, i32) {
    %c0_i32 = arith.constant 0 : i32
    %c0_i32_0 = arith.constant 0 : i32
    return %c0_i32, %arg1 : i32, i32
  }
  func.func @transform_2(%arg0: i32, %arg1: i32) -> (i32, i32) {
    %c0_i32 = arith.constant 0 : i32
    %c0_i32_0 = arith.constant 0 : i32
    return %c0_i32, %arg1 : i32, i32
  }
  func.func @transform_3(%arg0: i32, %arg1: i32) -> (i32, i32) {
    %c0_i32 = arith.constant 0 : i32
    return %arg0, %arg1 : i32, i32
  }
}

</mosaic_0001>

<bundles_post_ra>
// kernel: tpu_custom_call.1
= control target key start
LH: loop header
LB: loop body
LE: loop exit
PB: predicated region body
PF: predicated region fallthrough
CT: control target
= control target key end

     0   :  { %8 = vsyncpa [#allocation3], 0  ;;  %s330_s0 = inlined_call_operand.hbm [shape: f32[8,128], index: 0, kind: input, shape index: {}]   ;;  %s331_s1 = inlined_call_operand.hbm [shape: bf16[128,128], index: 1, kind: input, shape index: {}]   ;;  %s332_s2 = inlined_call_operand.vmem [shape: f32[1,128], index: 2, kind: input, shape index: {}]   ;;  %s333_s3 = inlined_call_operand.hbm [shape: f32[8,128], index: 3, kind: output, shape index: {}]  }
   0x1   :  { %9 = vsyncpa [#allocation6], 0 }
   0x2   :  { %10 = vsyncpa [#allocation4], 0  ;;  %s291_s12 = smov [#allocation2]   ;;  %s292_s14 = smov [#allocation5]  }
   0x3   :  { %s17_s13 = sshll.u32 %s291_s12, 4  ;;  %s26_s15 = sshll.u32 %s292_s14, 4  ;;  %s18_s13 = int_to_ptr.vmem [resolvable:$true] %s17_s13  ;;  %s27_s15 = int_to_ptr.vmem [resolvable:$true] %s26_s15 }
   0x4   :  { %s233_s16 = scalar_lea.vmem %s18_s13, 128  ;;  %p238_p1 = scmp.lt.s32.totalorder %s18_s13, %s18_s13 }
   0x5   :  { %p234_p0 = scmp.ne.s32.totalorder %s18_s13, %s233_s16  ;;  %p239_p2 = scmp.lt.s32.totalorder %s233_s16, %s233_s16 }
   0x7   :  { %p240_p3 = por %p239_p2, %p238_p1 }
   0x9   :  { %p241_p4 = pnand %p240_p3, %p234_p0 }
   0xb   :  { %244 = shalt.err (!%p241_p4)
}
   0xc   :  { %20 = dma.hbm_to_vmem [thread:$0]  %s330_s0, 128, %s18_s13, [#allocation3]  }
   0xd   :  { %s253_s19 = scalar_lea.vmem %s27_s15, 1024  ;;  %p258_p6 = scmp.lt.s32.totalorder %s27_s15, %s27_s15 }
   0xe   :  { %p254_p5 = scmp.ne.s32.totalorder %s27_s15, %s253_s19  ;;  %p259_p7 = scmp.lt.s32.totalorder %s253_s19, %s253_s19 }
  0x10   :  { %p260_p8 = por %p259_p7, %p258_p6 }
  0x12   :  { %p261_p9 = pnand %p260_p8, %p254_p5 }
  0x14   :  { %264 = shalt.err (!%p261_p9)
}
  0x15   :  { %s293_s20 = smov 64   ;;  %s294_s21 = smov 4  }
  0x16   :  { %32 = dma.hbm_to_vmem [thread:$0]  %s331_s1, 1024, %s27_s15, [#allocation6], %s293_s20, %s293_s20, %s294_s21  }
  0x17   :  { %285 = dma.done.wait [#allocation3], 128  }
  0x18   :  { %286 = vsyncadd [#allocation3], 4294967168 }
  0x19   :  { %287 = dma.done.wait [#allocation6], 1024  }
  0x1a   :  { %288 = vsyncadd [#allocation6], 4294966272  ;;  %v295_v0 = vmov 0.0   ;;  %vm296_vm0 = vmmov 0   ;;  %v217_v1 = vld [vmem:[#allocation5 + $0x38] sm:$0xff]   ;;  %v218_v2 = vld [vmem:[#allocation5 + $0x30] sm:$0xff]  }
  0x1b   :  { %190 = vmatprep.subr.bf16.mxu0 %v295_v0  ;;  %206 = vmatprep.mubr.msk.bf16.mxu0 %vm296_vm0, %v295_v0  ;;  %v219_v3 = vld [vmem:[#allocation5 + $0x28] sm:$0xff]   ;;  %v220_v4 = vld [vmem:[#allocation5 + $0x20] sm:$0xff]   ;;  %v221_v5 = vld [vmem:[#allocation5 + $0x18] sm:$0xff]   ;;  %s297_s24 = smov [#allocation7]  }
  0x1c   :  { %191 = vmatpush3.bf16.msra.mxu0 %v217_v1  ;;  %v222_v6 = vld [vmem:[#allocation5 + $0x10] sm:$0xff]   ;;  %v223_v7 = vld [vmem:[#allocation5 + $0x8] sm:$0xff]   ;;  %v224_v8 = vld [vmem:[#allocation5] sm:$0xff]   ;;  %s162_s25 = sshll.u32 %s297_s24, 4  ;;  %s163_s25 = int_to_ptr.vmem [resolvable:$true] %s162_s25 }
  0x1d   :  { %192 = vmatprep.subr.bf16.mxu0 %v295_v0  ;;  %v42_v9 = vld [vmem:[#allocation2] sm:$0xff]  ;;  %s265_s26 = scalar_lea.vmem %s163_s25, 128  ;;  %p270_p11 = scmp.lt.s32.totalorder %s163_s25, %s163_s25 }
  0x1e   :  { %v43_v10 = vpack.c.bf16 %v42_v9, %v42_v9  ;;  %v172_v11 = vld [vmem:[%s332_s2] ss:$0 sm:$0xff]  ;;  %p266_p10 = scmp.ne.s32.totalorder %s163_s25, %s265_s26  ;;  %p271_p12 = scmp.lt.s32.totalorder %s265_s26, %s265_s26 }
  0x20   :  { %193 = vmatpush3.bf16.msra.mxu0 %v218_v2  ;;  %p272_p13 = por %p271_p12, %p270_p11 }
  0x21   :  { %194 = vmatprep.subr.bf16.mxu0 %v295_v0 }
  0x22   :  { %p273_p0 = pnand %p272_p13, %p266_p10 }
  0x24   :  { %195 = vmatpush3.bf16.msra.mxu0 %v219_v3 }
  0x25   :  { %196 = vmatprep.subr.bf16.mxu0 %v295_v0 }
  0x28   :  { %197 = vmatpush3.bf16.msra.mxu0 %v220_v4 }
  0x29   :  { %198 = vmatprep.subr.bf16.mxu0 %v295_v0 }
  0x2c   :  { %199 = vmatpush3.bf16.msra.mxu0 %v221_v5 }
  0x2d   :  { %200 = vmatprep.subr.bf16.mxu0 %v295_v0 }
  0x30   :  { %201 = vmatpush3.bf16.msra.mxu0 %v222_v6 }
  0x31   :  { %202 = vmatprep.subr.bf16.mxu0 %v295_v0 }
  0x34   :  { %203 = vmatpush3.bf16.msra.mxu0 %v223_v7 }
  0x35   :  { %204 = vmatprep.subr.bf16.mxu0 %v295_v0 }
  0x38   :  { %205 = vmatpush3.bf16.msra.mxu0 %v224_v8 }
  0x3b   :  { %207 = vmatmul.mubr.bf16.vlgmr.msra.gmra.mxu0 %v43_v10 }
  0xfb   :  { %v149_v12 = vpop.f32.mrf.mxu0 }
  0xfc   :  { %v150_v13 = vadd.f32 %v172_v11, %v149_v12 }
  0xfd   :  { %v208_v14 = vpop.f32.mrf.mxu0 }
  0xfe   :  { %155 = vst [vmem:[#allocation7] sm:$0xff] %v150_v13 }
  0xff   :  { %v152_v15 = vpop.f32.mrf.mxu0 }
 0x100   :  { %276 = shalt.err (!%p273_p0)
}
 0x101   :  { %165 = dma.vmem_to_hbm [thread:$0]  %s163_s25, 128, %s333_s3, [#allocation4]   ;;  %v209_v16 = vpop.f32.mrf.mxu0 }
 0x102   :  { %289 = dma.done.wait [#allocation4], 128  }
 0x103   :  { %290 = vsyncadd [#allocation4], 4294967168 }
 0x104   :  { %169 = vsyncpa [#allocation3], 1 }
 0x105   :  { %170 = vsyncpa [#allocation6], 1 }
 0x106   :  { %171 = vsyncpa [#allocation4], 1 }

</bundles_post_ra>
